<compile_context>
chip_gen: v7x
topology: tpu7x:2x2x1
jax: 0.10.0
libtpu: 0.0.40
codegen_flags: <defaults>
</compile_context>

<pallas_src>
import math
import functools
from copy import deepcopy

import numpy as np
import jax
import jax.numpy as jnp
from jax.experimental import pallas as pl
from jax.experimental.pallas import tpu as pltpu


# ----------------------------------------------------------------------------
# Color-pattern construction (pure Python, identical semantics to the module).
# Runs once at layer construction; no Pallas equivalent needed.
# ----------------------------------------------------------------------------
def create_colored_matrix(input_generators, output_generators):
    assert len(input_generators) == len(output_generators)
    assert len(input_generators) > 0
    p = len(input_generators)
    n = len(input_generators[0])
    m = len(output_generators[0])
    colors = {}
    for i in range(n):
        for j in range(m):
            colors[i, j] = i * m + j
    while True:
        old_colors = colors.copy()
        for k in range(p):
            input_gen = input_generators[k]
            output_gen = output_generators[k]
            for i in range(n):
                for j in range(m):
                    colors[i, j] = min(colors[i, j], colors[input_gen[i], output_gen[j]])
                    colors[input_gen[i], output_gen[j]] = colors[i, j]
        if colors == old_colors:
            break
    colors_list = sorted(list(set(colors.values())))
    num_colors = len(colors_list)
    color_to_idx = {colors_list[i]: i for i in range(num_colors)}
    for k, v in colors.items():
        colors[k] = color_to_idx[v]
    assert min(colors.values()) == 0
    assert max(colors.values()) == num_colors - 1
    return colors


def create_colored_vector(output_generators):
    assert len(output_generators) > 0
    p = len(output_generators)
    m = len(output_generators[0])
    colors = {i: i for i in range(m)}
    while True:
        old_colors = colors.copy()
        for k in range(p):
            output_gen = output_generators[k]
            for i in range(m):
                colors[i] = min(colors[i], colors[output_gen[i]])
                colors[output_gen[i]] = colors[i]
        if colors == old_colors:
            break
    colors_list = sorted(list(set(colors.values())))
    num_colors = len(colors_list)
    color_to_idx = {colors_list[i]: i for i in range(num_colors)}
    for k, v in colors.items():
        colors[k] = color_to_idx[v]
    assert min(colors.values()) == 0
    assert max(colors.values()) == num_colors - 1
    return colors


# ----------------------------------------------------------------------------
# Pallas kernels: y = x @ W^T (+ b), bf16 inputs, f32 accumulation.
# ----------------------------------------------------------------------------
def _matmul_bias_kernel_single(x_ref, wt_ref, b_ref, o_ref):
    # Single pass over K (tk == Kp): no accumulator scratch, no branches.
    acc = jnp.dot(x_ref[...], wt_ref[...], preferred_element_type=jnp.float32)
    o_ref[...] = (acc + b_ref[...]).astype(o_ref.dtype)


def _matmul_kernel_single(x_ref, wt_ref, o_ref):
    o_ref[...] = jnp.dot(x_ref[...], wt_ref[...],
                         preferred_element_type=jnp.float32).astype(o_ref.dtype)


def _matmul_bias_kernel_kloop(x_ref, wt_ref, b_ref, o_ref, acc_ref):
    # K-reduction fallback: f32 accumulator initialized with the broadcast
    # bias at k == 0 (so the epilogue is a plain cast+store).
    k = pl.program_id(2)

    @pl.when(k == 0)
    def _():
        acc_ref[...] = jnp.zeros_like(acc_ref) + b_ref[...]

    acc_ref[...] += jnp.dot(x_ref[...], wt_ref[...],
                            preferred_element_type=jnp.float32)

    @pl.when(k == pl.num_programs(2) - 1)
    def _():
        o_ref[...] = acc_ref[...].astype(o_ref.dtype)


def _matmul_kernel_kloop(x_ref, wt_ref, o_ref, acc_ref):
    k = pl.program_id(2)

    @pl.when(k == 0)
    def _():
        acc_ref[...] = jnp.zeros_like(acc_ref)

    acc_ref[...] += jnp.dot(x_ref[...], wt_ref[...],
                            preferred_element_type=jnp.float32)

    @pl.when(k == pl.num_programs(2) - 1)
    def _():
        o_ref[...] = acc_ref[...].astype(o_ref.dtype)


# ----------------------------------------------------------------------------
# Tiling helpers
# ----------------------------------------------------------------------------
_TM_CAP = 256            # rows of x / output per tile
_TN_CAP = 1024           # output columns per tile (lane-dense, mult of 128)
_TK_CAP = 1024           # contraction tile when the K-loop path is used
_K_SINGLE_PASS_CAP = 2048  # collapse the K axis entirely up to this (padded) K


def _round_up(x, m):
    return (x + m - 1) // m * m


def _largest_divisor_tile(dim, align, cap):
    """Largest multiple of `align` that divides `dim` (itself a multiple of
    `align`) and is <= cap.  Divisor-based => zero round-up-to-tile waste."""
    best = align
    t = align
    limit = min(cap, dim)
    while t <= limit:
        if dim % t == 0:
            best = t
        t += align
    return best


def _pallas_linear(xp, wtp, bp, out_dtype):
    """y = xp @ wtp (+ bp).  xp: (Mp, Kp) bf16, wtp: (Kp, Np) bf16 (already
    padded at refresh time), bp: (1, Np) f32 or None.  Returns (Mp, Np) in
    out_dtype."""
    Mp, Kp = xp.shape
    Kw, Np = wtp.shape
    assert Kw == Kp

    tm = _largest_divisor_tile(Mp, 16, _TM_CAP)
    tn = _largest_divisor_tile(Np, 128, _TN_CAP)

    single_k = Kp <= _K_SINGLE_PASS_CAP
    tk = Kp if single_k else _largest_divisor_tile(Kp, 128, _TK_CAP)

    # v7x dual-TC: make sure at least one "parallel" grid axis has extent >= 2
    # when the shapes would otherwise give a (1, 1) grid.
    if Mp // tm == 1 and Np // tn == 1 and tn >= 256:
        tn //= 2

    has_bias = bp is not None

    compiler_params = pltpu.CompilerParams(
        dimension_semantics=(("parallel", "parallel") if single_k
                             else ("parallel", "parallel", "arbitrary")),
        vmem_limit_bytes=32 * 1024 * 1024,
    )

    if single_k:
        grid = (Mp // tm, Np // tn)
        in_specs = [
            pl.BlockSpec((tm, tk), lambda i, j: (i, 0)),
            pl.BlockSpec((tk, tn), lambda i, j: (0, j)),
        ]
        operands = [xp, wtp]
        if has_bias:
            in_specs.append(pl.BlockSpec((1, tn), lambda i, j: (0, j)))
            operands.append(bp)
            kernel = _matmul_bias_kernel_single
        else:
            kernel = _matmul_kernel_single
        out_spec = pl.BlockSpec((tm, tn), lambda i, j: (i, j))
        scratch = []
    else:
        grid = (Mp // tm, Np // tn, Kp // tk)
        in_specs = [
            pl.BlockSpec((tm, tk), lambda i, j, k: (i, k)),
            pl.BlockSpec((tk, tn), lambda i, j, k: (k, j)),
        ]
        operands = [xp, wtp]
        if has_bias:
            # bias block index independent of k -> stays resident across K
            in_specs.append(pl.BlockSpec((1, tn), lambda i, j, k: (0, j)))
            operands.append(bp)
            kernel = _matmul_bias_kernel_kloop
        else:
            kernel = _matmul_kernel_kloop
        out_spec = pl.BlockSpec((tm, tn), lambda i, j, k: (i, j))
        scratch = [pltpu.VMEM((tm, tn), jnp.float32)]

    return pl.pallas_call(
        kernel,
        out_shape=jax.ShapeDtypeStruct((Mp, Np), out_dtype),
        grid_spec=pltpu.PrefetchScalarGridSpec(
            num_scalar_prefetch=0,
            grid=grid,
            in_specs=in_specs,
            out_specs=out_spec,
            scratch_shapes=scratch,
        ),
        compiler_params=compiler_params,
    )(*operands)


@functools.partial(jax.jit, static_argnums=(3, 4))
def _linear_equiv_apply(x, wtp, bp, out_channels, out_features):
    """Full forward: flatten (C_in, F_in) -> pad x -> matmul(+bias) kernel ->
    slice -> reshape.  wtp / bp are pre-padded, pre-cast (static) buffers."""
    batch_shape = x.shape[:-2]
    in_channels, in_features = x.shape[-2], x.shape[-1]
    B = int(np.prod(batch_shape)) if batch_shape else 1
    n_in = in_channels * in_features
    n_out = out_channels * out_features
    Kp = wtp.shape[0]

    x2 = x.reshape(B, n_in).astype(jnp.bfloat16)      # bf16 inputs, f32 accum
    Mp = _round_up(B, 16)                              # 16-row bf16 sublane pack
    if Mp != B or Kp != n_in:
        x2 = jnp.pad(x2, ((0, Mp - B), (0, Kp - n_in)))

    y = _pallas_linear(x2, wtp, bp, x.dtype)           # (Mp, Np) in x.dtype
    y = y[:B, :n_out]
    return y.reshape(*batch_shape, out_channels, out_features)


# ----------------------------------------------------------------------------
# LinearEquiv (forward only)
# ----------------------------------------------------------------------------
class LinearEquivJax:
    def __init__(self, in_generators, out_generators, in_channels, out_channels,
                 bias=True, fan='default', key=None):
        self.in_features = len(in_generators[0])
        self.out_features = len(out_generators[0])
        self.in_generators = deepcopy(in_generators)
        self.out_generators = deepcopy(out_generators)
        self.in_channels = in_channels
        self.out_channels = out_channels

        self.colors_W = create_colored_matrix(in_generators, out_generators)
        self.colors_b = create_colored_vector(out_generators)
        self.num_colors_W = len(set(self.colors_W.values()))
        self.num_colors_b = len(set(self.colors_b.values()))
        self.num_weights_W = self.num_colors_W * in_channels * out_channels
        self.num_weights_b = self.num_colors_b * out_channels

        # ---- deterministic parameter init (kaiming_uniform_ semantics) ----
        if fan == 'default':
            fan_in = self.in_features * self.in_channels
        elif fan == 'channels':
            fan_in = self.in_channels
        elif fan == 'features':
            fan_in = self.in_features
        else:
            raise ValueError("fan must be one of 'default', 'channels' or 'features'")
        a = math.sqrt(5)
        gain = math.sqrt(2.0 / (1.0 + a * a))            # calculate_gain('leaky_relu', a)
        bound_w = math.sqrt(3.0) * gain / math.sqrt(fan_in)
        bound_b = 1.0 / math.sqrt(fan_in)

        if key is None:
            key = jax.random.PRNGKey(0)
        kw, kb = jax.random.split(key)
        self.weight = jax.random.uniform(
            kw, (self.num_weights_W,), jnp.float32, minval=-bound_w, maxval=bound_w)
        self.bias = (jax.random.uniform(
            kb, (self.num_weights_b,), jnp.float32, minval=-bound_b, maxval=bound_b)
            if bias else None)

        # ---- index buffers for weight sharing (same as the torch buffers) ----
        idx_weight = np.zeros(
            (self.out_features * out_channels, self.in_features * in_channels), dtype=np.int32)
        for i in range(out_channels):
            row_base = i * self.out_features
            for j in range(in_channels):
                col_base = j * self.in_features
                v_base = (i * in_channels + j) * self.num_colors_W
                for k, v in self.colors_W.items():
                    idx_weight[row_base + k[1], col_base + k[0]] = v_base + v
        self.idx_weight = jnp.asarray(idx_weight)
        # Transposed index: gather yields W^T directly (no transpose op needed).
        self.idx_weight_T = jnp.asarray(idx_weight.T)

        idx_bias = np.zeros((self.out_features * out_channels,), dtype=np.int32)
        for i in range(out_channels):
            row_base = i * self.out_features
            v_base = i * self.num_colors_b
            for k, v in self.colors_b.items():
                idx_bias[row_base + k] = v_base + v
        self.idx_bias = jnp.asarray(idx_bias)

        # ---- materialize dense W^T (bf16, padded) and bias (f32, padded) ONCE ----
        # TODO(synk): if the shared parameters are updated (training), call
        # refresh_dense_params() again before the next forward.
        self.refresh_dense_params()

    def refresh_dense_params(self):
        n_in = self.in_features * self.in_channels
        n_out = self.out_features * self.out_channels
        Kp = _round_up(n_in, 128)
        Np = _round_up(n_out, 128)

        wt = self.weight[self.idx_weight_T].astype(jnp.bfloat16)       # (n_in, n_out)
        if Kp != n_in or Np != n_out:
            wt = jnp.pad(wt, ((0, Kp - n_in), (0, Np - n_out)))
        self.wt_padded = wt                                            # (Kp, Np) bf16

        if self.bias is not None:
            b = self.bias[self.idx_bias].astype(jnp.float32).reshape(1, n_out)
            if Np != n_out:
                b = jnp.pad(b, ((0, 0), (0, Np - n_out)))
            self.b_padded = b                                          # (1, Np) f32
        else:
            self.b_padded = None

    def __call__(self, x):
        assert x.shape[-1] == self.in_features
        assert x.shape[-2] == self.in_channels
        return _linear_equiv_apply(x, self.wt_padded, self.b_padded,
                                   self.out_channels, self.out_features)


if __name__ == "__main__":
    # Small, deterministic example: cyclic group Z_8 acting on 8 features.
    n_feat = 8
    cyclic = [list(range(1, n_feat)) + [0]]       # single generator: cyclic shift
    in_generators = cyclic
    out_generators = cyclic
    in_channels, out_channels = 4, 4
    batch = 2

    key = jax.random.PRNGKey(0)
    k_param, k_x = jax.random.split(key)

    layer = LinearEquivJax(in_generators, out_generators,
                           in_channels, out_channels, bias=True, key=k_param)

    x = jax.random.normal(k_x, (batch, in_channels, n_feat), jnp.float32)

    y = layer(x)
    y = jax.block_until_ready(y)

    # Pure-JAX f32 reference for correctness (kernel uses bf16 inputs with f32
    # accumulation, so a moderately loose tolerance is expected).
    W_ref = layer.weight[layer.idx_weight]                 # (N_out, N_in) f32
    b_ref = layer.bias[layer.idx_bias]                     # (N_out,) f32
    x_flat = x.reshape(batch, in_channels * n_feat)
    y_ref = (x_flat @ W_ref.T + b_ref).reshape(batch, out_channels, layer.out_features)

    assert y.shape == (batch, out_channels, layer.out_features)
    np.testing.assert_allclose(np.asarray(y), np.asarray(y_ref), rtol=3e-2, atol=3e-2)

    print("KERNEL_OK")
</pallas_src>

<mosaic_0001>
module attributes {stable_mosaic.version = 11 : i64} {
  func.func @_matmul_bias_kernel_single(%arg0: i32, %arg1: i32, %arg2: memref<16x128xbf16, #tpu.memory_space<vmem>>, %arg3: memref<128x128xbf16, #tpu.memory_space<vmem>>, %arg4: memref<1x128xf32, #tpu.memory_space<vmem>>, %arg5: memref<16x128xf32, #tpu.memory_space<vmem>>) attributes {dimension_semantics = [#tpu.dimension_semantics<parallel>, #tpu.dimension_semantics<parallel>], iteration_bounds = array<i64: 1, 1>, scalar_prefetch = 0 : i64, scratch_operands = 0 : i64, tpu.core_type = #tpu.core_type<tc>, window_params = [{transform_indices = @transform_0, window_bounds = array<i64: 16, 128>}, {transform_indices = @transform_1, window_bounds = array<i64: 128, 128>}, {transform_indices = @transform_2, window_bounds = array<i64: 1, 128>}, {transform_indices = @transform_3, window_bounds = array<i64: 16, 128>}]} {
    %c0 = arith.constant 0 : index
    %c0_0 = arith.constant 0 : index
    %0 = vector.load %arg2[%c0, %c0_0] : memref<16x128xbf16, #tpu.memory_space<vmem>>, vector<16x128xbf16>
    %c0_1 = arith.constant 0 : index
    %c0_2 = arith.constant 0 : index
    %1 = vector.load %arg3[%c0_1, %c0_2] : memref<128x128xbf16, #tpu.memory_space<vmem>>, vector<128x128xbf16>
    %cst = arith.constant dense<0.000000e+00> : vector<16x128xf32>
    %2 = tpu.matmul %0, %1, %cst {dimension_numbers = #tpu.dot_dimension_numbers<[1], [0], [0], [1], [0, 0, 1, 1], [], []>} : vector<16x128xbf16>, vector<128x128xbf16>, vector<16x128xf32> -> vector<16x128xf32>
    %c0_3 = arith.constant 0 : index
    %c0_4 = arith.constant 0 : index
    %3 = vector.load %arg4[%c0_3, %c0_4] : memref<1x128xf32, #tpu.memory_space<vmem>>, vector<1x128xf32>
    %4 = vector.broadcast %3 : vector<1x128xf32> to vector<16x128xf32>
    %5 = arith.addf %2, %4 : vector<16x128xf32>
    %c0_5 = arith.constant 0 : index
    %c0_6 = arith.constant 0 : index
    %6 = vector.load %arg5[%c0_5, %c0_6] : memref<16x128xf32, #tpu.memory_space<vmem>>, vector<16x128xf32>
    tpu.vector_store %arg5[%c0_5, %c0_6], %5 {strides = array<i32>} : memref<16x128xf32, #tpu.memory_space<vmem>>, vector<16x128xf32>,
    return
  }
  func.func @transform_0(%arg0: i32, %arg1: i32) -> (i32, i32) {
    %c0_i32 = arith.constant 0 : i32
    %c0_i32_0 = arith.constant 0 : i32
    return %arg0, %c0_i32 : i32, i32
  }
  func.func @transform_1(%arg0: i32, %arg1: i32) -> (i32, i32) {
    %c0_i32 = arith.constant 0 : i32
    %c0_i32_0 = arith.constant 0 : i32
    return %c0_i32, %arg1 : i32, i32
  }
  func.func @transform_2(%arg0: i32, %arg1: i32) -> (i32, i32) {
    %c0_i32 = arith.constant 0 : i32
    %c0_i32_0 = arith.constant 0 : i32
    return %c0_i32, %arg1 : i32, i32
  }
  func.func @transform_3(%arg0: i32, %arg1: i32) -> (i32, i32) {
    %c0_i32 = arith.constant 0 : i32
    return %arg0, %arg1 : i32, i32
  }
}

</mosaic_0001>

<bundles_post_ra>
// kernel: _linear_equiv_apply.1
= control target key start
LH: loop header
LB: loop body
LE: loop exit
PB: predicated region body
PF: predicated region fallthrough
CT: control target
= control target key end

     0   :  { %8 = vsyncpa [#allocation3], 0  ;;  %s233_s12 = smov [#allocation2]   ;;  %s282_s0 = inlined_call_operand.vmem [shape: bf16[16,128], index: 0, kind: input, shape index: {}]   ;;  %s283_s1 = inlined_call_operand.hbm [shape: bf16[128,128], index: 1, kind: input, shape index: {}]   ;;  %s284_s2 = inlined_call_operand.vmem [shape: f32[1,128], index: 2, kind: input, shape index: {}]   ;;  %s285_s3 = inlined_call_operand.vmem [shape: f32[16,128], index: 3, kind: output, shape index: {}]  }
   0x1   :  { %s16_s13 = sshll.u32 %s233_s12, 4  ;;  %s209_s16 = scalar_lea.hbm %s283_s1, 1024  ;;  %s17_s13 = int_to_ptr.vmem [resolvable:$true] %s16_s13 }
   0x2   :  { %p210_p0 = scmp.ne.s32.totalorder %s283_s1, %s209_s16  ;;  %p213_p1 = scmp.lt.u32.totalorder %s209_s16, %s283_s1 }
   0x4   :  { %p215_p2 = pnand %p213_p1, %p210_p0 }
   0x6   :  { %218 = shalt.err (!%p215_p2)
}
   0x7   :  { %s219_s21 = scalar_lea.vmem %s17_s13, 1024  ;;  %p224_p4 = scmp.lt.s32.totalorder %s17_s13, %s17_s13 }
   0x8   :  { %p220_p3 = scmp.ne.s32.totalorder %s17_s13, %s219_s21  ;;  %p225_p5 = scmp.lt.s32.totalorder %s219_s21, %s219_s21 }
   0xa   :  { %p226_p6 = por %p225_p5, %p224_p4 }
   0xc   :  { %p227_p7 = pnand %p226_p6, %p220_p3 }
   0xe   :  { %230 = shalt.err (!%p227_p7)
}
   0xf   :  { %s234_s22 = smov 64   ;;  %s235_s23 = smov 4  }
  0x10   :  { %22 = dma.hbm_to_vmem [thread:$0]  %s283_s1, 1024, %s17_s13, [#allocation3], %s234_s22, %s234_s22, %s235_s23  }
  0x11   :  { %231 = dma.done.wait [#allocation3], 1024  }
  0x12   :  { %232 = vsyncadd [#allocation3], 4294966272  ;;  %v236_v0 = vmov 0.0   ;;  %vm237_vm0 = vmmov 0   ;;  %v200_v1 = vld [vmem:[#allocation2] sm:$0xff]   ;;  %v201_v2 = vld [vmem:[#allocation2 + $0x8] sm:$0xff]  }
  0x13   :  { %175 = vmatprep.subr.bf16.mxu0 %v236_v0  ;;  %191 = vmatprep.mubr.msk.bf16.mxu0 %vm237_vm0, %v236_v0  ;;  %v202_v3 = vld [vmem:[#allocation2 + $0x10] sm:$0xff]   ;;  %v203_v4 = vld [vmem:[#allocation2 + $0x18] sm:$0xff]   ;;  %v204_v5 = vld [vmem:[#allocation2 + $0x20] sm:$0xff]  }
  0x14   :  { %176 = vmatpush3.bf16.msra.mxu0 %v200_v1  ;;  %v205_v6 = vld [vmem:[#allocation2 + $0x28] sm:$0xff]   ;;  %v206_v7 = vld [vmem:[#allocation2 + $0x30] sm:$0xff]   ;;  %v207_v8 = vld [vmem:[#allocation2 + $0x38] sm:$0xff]  }
  0x15   :  { %177 = vmatprep.subr.bf16.mxu0 %v236_v0  ;;  %v208_v9 = vld [vmem:[%s282_s0] sm:$0xff]  }
  0x16   :  { %v156_v10 = vld [vmem:[%s284_s2] ss:$0 sm:$0xff] }
  0x18   :  { %178 = vmatpush3.bf16.msra.mxu0 %v201_v2 }
  0x19   :  { %179 = vmatprep.subr.bf16.mxu0 %v236_v0 }
  0x1c   :  { %180 = vmatpush3.bf16.msra.mxu0 %v202_v3 }
  0x1d   :  { %181 = vmatprep.subr.bf16.mxu0 %v236_v0 }
  0x20   :  { %182 = vmatpush3.bf16.msra.mxu0 %v203_v4 }
  0x21   :  { %183 = vmatprep.subr.bf16.mxu0 %v236_v0 }
  0x24   :  { %184 = vmatpush3.bf16.msra.mxu0 %v204_v5 }
  0x25   :  { %185 = vmatprep.subr.bf16.mxu0 %v236_v0 }
  0x28   :  { %186 = vmatpush3.bf16.msra.mxu0 %v205_v6 }
  0x29   :  { %187 = vmatprep.subr.bf16.mxu0 %v236_v0 }
  0x2c   :  { %188 = vmatpush3.bf16.msra.mxu0 %v206_v7 }
  0x2d   :  { %189 = vmatprep.subr.bf16.mxu0 %v236_v0 }
  0x30   :  { %190 = vmatpush3.bf16.msra.mxu0 %v207_v8 }
  0x33   :  { %192 = vmatmul.mubr.bf16.vlgmr.msra.gmra.mrb[0].mxu0 %v208_v9 }
 0x106   :  { %v142_v11 = vpop.f32.mrb[0].mxu0 }
 0x107   :  { %v143_v12 = vadd.f32 %v156_v10, %v142_v11  ;;  %v193_v13 = vpop.f32.mrb[1].mxu0 }
 0x108   :  { %v145_v14 = vpop.f32.mrb[2].mxu0 }
 0x109   :  { %149 = vst [vmem:[%s285_s3] sm:$0xff] %v143_v12  ;;  %v146_v15 = vadd.f32 %v156_v10, %v145_v14  ;;  %v194_v16 = vpop.f32.mrb[3].mxu0 }
 0x10b   :  { %150 = vst [vmem:[%s285_s3 + $0x8] sm:$0xff] %v146_v15 }
 0x10c   :  { %155 = vsyncpa [#allocation3], 1 }

</bundles_post_ra>
